<compile_context>
chip_gen: v6e
topology: v6e:2x2x1
jax: 0.10.0
libtpu: 0.0.40
codegen_flags: <defaults>
</compile_context>

<pallas_src>
import jax
import jax.numpy as jnp
from jax.experimental import pallas as pl
from jax.experimental.pallas import tpu as pltpu

H1 = 64           # first hidden width
H2 = 128          # second hidden width
SUBLANE_BF16 = 16  # bf16 sublane packing -> batch tile must be a multiple of 16


def _round_up(n, m):
    return ((n + m - 1) // m) * m


def _cdiv(a, b):
    return -(-a // b)


def generator_kernel(x_ref, w1_ref, b1_ref, w2_ref, b2_ref, w3_ref, b3_ref, o_ref):
    # x is already bf16 (cast fused into the wrapper-side pad).
    x = x_ref[...]                                                     # (TB, D) bf16

    h1 = jnp.dot(x, w1_ref[...], preferred_element_type=jnp.float32) + b1_ref[...]
    h1 = jnp.maximum(h1, 0.0)                                          # ReLU, (TB, 64)

    h2 = jnp.dot(h1.astype(jnp.bfloat16), w2_ref[...],
                 preferred_element_type=jnp.float32) + b2_ref[...]
    h2 = jnp.maximum(h2, 0.0)                                          # ReLU, (TB, 128)

    h3 = jnp.dot(h2.astype(jnp.bfloat16), w3_ref[...],
                 preferred_element_type=jnp.float32) + b3_ref[...]     # (TB, OUT)
    o_ref[...] = jnp.tanh(h3)                                          # Tanh (EUP), f32 store


def _choose_tb(B, target_tb):
    """Pick a batch tile: multiple of 16, bounded pad waste, >=2 (even) steps
    for large batches so both v7x TensorCores get work."""
    b_align = _round_up(B, SUBLANE_BF16)
    if b_align <= target_tb:
        return b_align                      # single step covers the whole batch
    n_steps = _cdiv(b_align, target_tb)
    if n_steps % 2:                         # prefer even step count (v7x: 2 TCs)
        n_steps += 1
    return _round_up(_cdiv(b_align, n_steps), SUBLANE_BF16)


def generator_forward(x, params, *, tb=2048):
    B, noise_dim = x.shape
    w1, b1, w2, b2, w3, b3 = params
    output_dim = w3.shape[1]

    # Pre-cast weights to bf16 once (no lane padding; full-dim blocks are legal).
    w1b = w1.astype(jnp.bfloat16)
    w2b = w2.astype(jnp.bfloat16)
    w3b = w3.astype(jnp.bfloat16)

    tb = _choose_tb(B, max(SUBLANE_BF16, _round_up(int(tb), SUBLANE_BF16)))
    b_pad = _round_up(B, tb)
    grid = (b_pad // tb,)

    # bf16 x; pad batch rows only when needed (padded rows are sliced off below).
    xb = x.astype(jnp.bfloat16)
    if b_pad != B:
        xb = jnp.zeros((b_pad, noise_dim), jnp.bfloat16).at[:B].set(xb)

    flops = 2 * b_pad * (noise_dim * H1 + H1 * H2 + H2 * output_dim)
    bytes_accessed = (xb.size * 2
                      + w1b.size * 2 + w2b.size * 2 + w3b.size * 2
                      + b1.size * 4 + b2.size * 4 + b3.size * 4
                      + b_pad * output_dim * 4)

    out = pl.pallas_call(
        generator_kernel,
        out_shape=jax.ShapeDtypeStruct((b_pad, output_dim), jnp.float32),
        grid=grid,
        in_specs=[
            pl.BlockSpec((tb, noise_dim), lambda i: (i, 0)),    # x: streamed over batch
            pl.BlockSpec((noise_dim, H1), lambda i: (0, 0)),    # w1 (VMEM-resident)
            pl.BlockSpec((1, H1), lambda i: (0, 0)),            # b1
            pl.BlockSpec((H1, H2), lambda i: (0, 0)),           # w2
            pl.BlockSpec((1, H2), lambda i: (0, 0)),            # b2
            pl.BlockSpec((H2, output_dim), lambda i: (0, 0)),   # w3 (true width)
            pl.BlockSpec((1, output_dim), lambda i: (0, 0)),    # b3 (true width)
        ],
        out_specs=pl.BlockSpec((tb, output_dim), lambda i: (i, 0)),
        compiler_params=pltpu.CompilerParams(
            dimension_semantics=("parallel",)),                 # shard steps on v7x's 2 TCs
        cost_estimate=pl.CostEstimate(
            flops=flops,
            transcendentals=b_pad * output_dim,
            bytes_accessed=bytes_accessed),
    )(xb, w1b, b1, w2b, b2, w3b, b3)

    return out[:B]


def init_params(key, noise_dim, output_dim):
    """PyTorch-style uniform(-1/sqrt(fan_in), 1/sqrt(fan_in)) init.

    Weights stored pre-transposed as (in_features, out_features); biases as
    (1, out_features) so they broadcast cleanly inside the kernel.
    """
    dims = [(noise_dim, H1), (H1, H2), (H2, output_dim)]
    params = []
    for fan_in, fan_out in dims:
        key, kw, kb = jax.random.split(key, 3)
        bound = 1.0 / (fan_in ** 0.5)
        w = jax.random.uniform(kw, (fan_in, fan_out), jnp.float32, -bound, bound)
        b = jax.random.uniform(kb, (1, fan_out), jnp.float32, -bound, bound)
        params += [w, b]
    return tuple(params)


def reference_forward_bf16(x, params):
    """Plain-JAX reference using the same bf16-operand / f32-accum arithmetic."""
    w1, b1, w2, b2, w3, b3 = params
    bf = jnp.bfloat16
    h1 = jnp.maximum(jnp.dot(x.astype(bf), w1.astype(bf),
                             preferred_element_type=jnp.float32) + b1, 0.0)
    h2 = jnp.maximum(jnp.dot(h1.astype(bf), w2.astype(bf),
                             preferred_element_type=jnp.float32) + b2, 0.0)
    h3 = jnp.dot(h2.astype(bf), w3.astype(bf),
                 preferred_element_type=jnp.float32) + b3
    return jnp.tanh(h3)


def reference_forward_f32(x, params):
    """Full-f32 reference (matches PyTorch module math)."""
    w1, b1, w2, b2, w3, b3 = params
    h1 = jnp.maximum(x @ w1 + b1, 0.0)
    h2 = jnp.maximum(h1 @ w2 + b2, 0.0)
    return jnp.tanh(h2 @ w3 + b3)


if __name__ == "__main__":
    key = jax.random.PRNGKey(0)
    k_x, k_p = jax.random.split(key)

    batch = 8
    noise_dim = 16
    output_dim = 32

    x = jax.random.normal(k_x, (batch, noise_dim), jnp.float32)
    params = init_params(k_p, noise_dim, output_dim)

    out = generator_forward(x, params)
    out = jax.block_until_ready(out)

    ref_bf16 = reference_forward_bf16(x, params)
    ref_f32 = reference_forward_f32(x, params)

    assert out.shape == (batch, output_dim)
    assert jnp.allclose(out, ref_bf16, atol=2e-3, rtol=2e-3), "mismatch vs bf16 reference"
    assert jnp.allclose(out, ref_f32, atol=5e-2, rtol=5e-2), "mismatch vs f32 reference"

    print("KERNEL_OK")
</pallas_src>

<mosaic_0001>
module attributes {stable_mosaic.version = 11 : i64} {
  func.func @generator_kernel(%arg0: i32, %arg1: memref<16x16xbf16, #tpu.memory_space<vmem>>, %arg2: memref<16x64xbf16, #tpu.memory_space<vmem>>, %arg3: memref<1x64xf32, #tpu.memory_space<vmem>>, %arg4: memref<64x128xbf16, #tpu.memory_space<vmem>>, %arg5: memref<1x128xf32, #tpu.memory_space<vmem>>, %arg6: memref<128x32xbf16, #tpu.memory_space<vmem>>, %arg7: memref<1x32xf32, #tpu.memory_space<vmem>>, %arg8: memref<16x32xf32, #tpu.memory_space<vmem>>) attributes {dimension_semantics = [#tpu.dimension_semantics<parallel>], iteration_bounds = array<i64: 1>, scalar_prefetch = 0 : i64, scratch_operands = 0 : i64, tpu.core_type = #tpu.core_type<tc>, window_params = [{transform_indices = @transform_0, window_bounds = array<i64: 16, 16>}, {pipeline_mode = #tpu.pipeline_mode<synchronous>, transform_indices = @transform_1, window_bounds = array<i64: 16, 64>}, {pipeline_mode = #tpu.pipeline_mode<synchronous>, transform_indices = @transform_2, window_bounds = array<i64: 1, 64>}, {pipeline_mode = #tpu.pipeline_mode<synchronous>, transform_indices = @transform_3, window_bounds = array<i64: 64, 128>}, {pipeline_mode = #tpu.pipeline_mode<synchronous>, transform_indices = @transform_4, window_bounds = array<i64: 1, 128>}, {pipeline_mode = #tpu.pipeline_mode<synchronous>, transform_indices = @transform_5, window_bounds = array<i64: 128, 32>}, {pipeline_mode = #tpu.pipeline_mode<synchronous>, transform_indices = @transform_6, window_bounds = array<i64: 1, 32>}, {transform_indices = @transform_7, window_bounds = array<i64: 16, 32>}]} {
    %c0 = arith.constant 0 : index
    %c0_0 = arith.constant 0 : index
    %0 = vector.load %arg1[%c0, %c0_0] : memref<16x16xbf16, #tpu.memory_space<vmem>>, vector<16x16xbf16>
    %c0_1 = arith.constant 0 : index
    %c0_2 = arith.constant 0 : index
    %1 = vector.load %arg2[%c0_1, %c0_2] : memref<16x64xbf16, #tpu.memory_space<vmem>>, vector<16x64xbf16>
    %cst = arith.constant dense<0.000000e+00> : vector<16x64xf32>
    %2 = tpu.matmul %0, %1, %cst {dimension_numbers = #tpu.dot_dimension_numbers<[1], [0], [0], [1], [0, 0, 1, 1], [], []>} : vector<16x16xbf16>, vector<16x64xbf16>, vector<16x64xf32> -> vector<16x64xf32>
    %c0_3 = arith.constant 0 : index
    %c0_4 = arith.constant 0 : index
    %3 = vector.load %arg3[%c0_3, %c0_4] : memref<1x64xf32, #tpu.memory_space<vmem>>, vector<1x64xf32>
    %4 = vector.broadcast %3 : vector<1x64xf32> to vector<16x64xf32>
    %5 = arith.addf %2, %4 : vector<16x64xf32>
    %cst_5 = arith.constant 0.000000e+00 : f32
    %6 = vector.broadcast %cst_5 : f32 to vector<16x64xf32>
    %7 = arith.maximumf %5, %6 : vector<16x64xf32>
    %8 = arith.truncf %7 : vector<16x64xf32> to vector<16x64xbf16>
    %c0_6 = arith.constant 0 : index
    %c0_7 = arith.constant 0 : index
    %9 = vector.load %arg4[%c0_6, %c0_7] : memref<64x128xbf16, #tpu.memory_space<vmem>>, vector<64x128xbf16>
    %cst_8 = arith.constant dense<0.000000e+00> : vector<16x128xf32>
    %10 = tpu.matmul %8, %9, %cst_8 {dimension_numbers = #tpu.dot_dimension_numbers<[1], [0], [0], [1], [0, 0, 1, 1], [], []>} : vector<16x64xbf16>, vector<64x128xbf16>, vector<16x128xf32> -> vector<16x128xf32>
    %c0_9 = arith.constant 0 : index
    %c0_10 = arith.constant 0 : index
    %11 = vector.load %arg5[%c0_9, %c0_10] : memref<1x128xf32, #tpu.memory_space<vmem>>, vector<1x128xf32>
    %12 = vector.broadcast %11 : vector<1x128xf32> to vector<16x128xf32>
    %13 = arith.addf %10, %12 : vector<16x128xf32>
    %cst_11 = arith.constant 0.000000e+00 : f32
    %14 = vector.broadcast %cst_11 : f32 to vector<16x128xf32>
    %15 = arith.maximumf %13, %14 : vector<16x128xf32>
    %16 = arith.truncf %15 : vector<16x128xf32> to vector<16x128xbf16>
    %c0_12 = arith.constant 0 : index
    %c0_13 = arith.constant 0 : index
    %17 = vector.load %arg6[%c0_12, %c0_13] : memref<128x32xbf16, #tpu.memory_space<vmem>>, vector<128x32xbf16>
    %cst_14 = arith.constant dense<0.000000e+00> : vector<16x32xf32>
    %18 = tpu.matmul %16, %17, %cst_14 {dimension_numbers = #tpu.dot_dimension_numbers<[1], [0], [0], [1], [0, 0, 1, 1], [], []>} : vector<16x128xbf16>, vector<128x32xbf16>, vector<16x32xf32> -> vector<16x32xf32>
    %c0_15 = arith.constant 0 : index
    %c0_16 = arith.constant 0 : index
    %19 = vector.load %arg7[%c0_15, %c0_16] : memref<1x32xf32, #tpu.memory_space<vmem>>, vector<1x32xf32>
    %20 = vector.broadcast %19 : vector<1x32xf32> to vector<16x32xf32>
    %21 = arith.addf %18, %20 : vector<16x32xf32>
    %22 = math.tanh %21 : vector<16x32xf32>
    %c0_17 = arith.constant 0 : index
    %c0_18 = arith.constant 0 : index
    %23 = vector.load %arg8[%c0_17, %c0_18] : memref<16x32xf32, #tpu.memory_space<vmem>>, vector<16x32xf32>
    tpu.vector_store %arg8[%c0_17, %c0_18], %22 {strides = array<i32>} : memref<16x32xf32, #tpu.memory_space<vmem>>, vector<16x32xf32>,
    return
  }
  func.func @transform_0(%arg0: i32) -> (i32, i32) {
    %c0_i32 = arith.constant 0 : i32
    %c0_i32_0 = arith.constant 0 : i32
    return %arg0, %c0_i32 : i32, i32
  }
  func.func @transform_1(%arg0: i32) -> (i32, i32) {
    %c0_i32 = arith.constant 0 : i32
    %c0_i32_0 = arith.constant 0 : i32
    %c0_i32_1 = arith.constant 0 : i32
    return %c0_i32, %c0_i32_0 : i32, i32
  }
  func.func @transform_2(%arg0: i32) -> (i32, i32) {
    %c0_i32 = arith.constant 0 : i32
    %c0_i32_0 = arith.constant 0 : i32
    %c0_i32_1 = arith.constant 0 : i32
    return %c0_i32, %c0_i32_0 : i32, i32
  }
  func.func @transform_3(%arg0: i32) -> (i32, i32) {
    %c0_i32 = arith.constant 0 : i32
    %c0_i32_0 = arith.constant 0 : i32
    %c0_i32_1 = arith.constant 0 : i32
    return %c0_i32, %c0_i32_0 : i32, i32
  }
  func.func @transform_4(%arg0: i32) -> (i32, i32) {
    %c0_i32 = arith.constant 0 : i32
    %c0_i32_0 = arith.constant 0 : i32
    %c0_i32_1 = arith.constant 0 : i32
    return %c0_i32, %c0_i32_0 : i32, i32
  }
  func.func @transform_5(%arg0: i32) -> (i32, i32) {
    %c0_i32 = arith.constant 0 : i32
    %c0_i32_0 = arith.constant 0 : i32
    %c0_i32_1 = arith.constant 0 : i32
    return %c0_i32, %c0_i32_0 : i32, i32
  }
  func.func @transform_6(%arg0: i32) -> (i32, i32) {
    %c0_i32 = arith.constant 0 : i32
    %c0_i32_0 = arith.constant 0 : i32
    %c0_i32_1 = arith.constant 0 : i32
    return %c0_i32, %c0_i32_0 : i32, i32
  }
  func.func @transform_7(%arg0: i32) -> (i32, i32) {
    %c0_i32 = arith.constant 0 : i32
    %c0_i32_0 = arith.constant 0 : i32
    return %arg0, %c0_i32 : i32, i32
  }
}

</mosaic_0001>

<bundles_post_ra>
// kernel: tpu_custom_call.1
= control target key start
LH: loop header
LB: loop body
LE: loop exit
PB: predicated region body
PF: predicated region fallthrough
CT: control target
= control target key end

     0   :  { %v436_v1 = vmov 0.0   ;;  %vm437_vm0 = vmmov 0   ;;  %vm50_vm1 = vcmask 130048   ;;  %s535_s0 = inlined_call_operand.vmem [shape: bf16[16,16], index: 0, kind: input, shape index: {}]   ;;  %s536_s1 = inlined_call_operand.vmem [shape: bf16[16,64], index: 1, kind: input, shape index: {}]   ;;  %s537_s2 = inlined_call_operand.vmem [shape: f32[1,64], index: 2, kind: input, shape index: {}]   ;;  %s538_s3 = inlined_call_operand.vmem [shape: bf16[64,128], index: 3, kind: input, shape index: {}]   ;;  %s539_s4 = inlined_call_operand.vmem [shape: f32[1,128], index: 4, kind: input, shape index: {}]   ;;  %s540_s5 = inlined_call_operand.vmem [shape: bf16[128,32], index: 5, kind: input, shape index: {}]   ;;  %s541_s6 = inlined_call_operand.vmem [shape: f32[1,32], index: 6, kind: input, shape index: {}]   ;;  %s542_s7 = inlined_call_operand.hbm [shape: f32[16,32], index: 7, kind: output, shape index: {}]  }
   0x1   :  { %v396_v0 = vld [vmem:[%s536_s1] sm:$0xff]   ;;  %353 = vmatprep.subr.bf16.mxu1 %v436_v1  ;;  %371 = vmatprep.subr.bf16.mxu0 %v436_v1  ;;  %v398_v3 = vld [vmem:[%s538_s3 + $0x18] sm:$0xff]  }
   0x2   :  { %v397_v2 = vld [vmem:[%s535_s0] sm:$0xff]   ;;  %354 = vmatpush3.bf16.msra.mxu1 %v396_v0  ;;  %355 = vmatprep.mubr.msk.bf16.mxu1 %vm437_vm0, %v436_v1 }
   0x3   :  { %359 = vmatprep.subr.bf16.mxu1 %v436_v1  ;;  %387 = vmatprep.mubr.msk.bf16.mxu0 %vm437_vm0, %v436_v1 }
   0x5   :  { %356 = vmatmul.mubr.msk.bf16.vlgmr.msra.gmra.mxu1 %vm50_vm1, %v397_v2 }
   0x6   :  { %360 = vmatpush3.bf16.msra.mxu1 %v398_v3  ;;  %367 = vmatprep.mubr.msk.bf16.mxu1 %vm437_vm0, %v436_v1 }
   0x7   :  { %361 = vmatprep.subr.bf16.mxu1 %v436_v1 }
   0x8   :  { %12 = vsyncpa [#allocation3], 0  ;;  %v399_v4 = vld [vmem:[%s538_s3 + $0x10] sm:$0xff]   ;;  %v400_v5 = vld [vmem:[%s538_s3 + $0x8] sm:$0xff]   ;;  %vm137_vm2 = vcmask 523264   ;;  %vm299_vm3 = vcmask 261120  }
   0x9   :  { %v401_v6 = vld [vmem:[%s538_s3] sm:$0xff]   ;;  %v402_v7 = vld [vmem:[%s540_s5 + $0x38] sm:$0xff]   ;;  %v403_v8 = vld [vmem:[%s540_s5 + $0x30] sm:$0xff]  }
   0xa   :  { %362 = vmatpush3.bf16.msra.mxu1 %v399_v4  ;;  %372 = vmatpush3.bf16.msra.mxu0 %v402_v7  ;;  %v404_v9 = vld [vmem:[%s540_s5 + $0x28] sm:$0xff]   ;;  %v405_v10 = vld [vmem:[%s540_s5 + $0x20] sm:$0xff]   ;;  %v406_v11 = vld [vmem:[%s540_s5 + $0x18] sm:$0xff]  }
   0xb   :  { %363 = vmatprep.subr.bf16.mxu1 %v436_v1  ;;  %373 = vmatprep.subr.bf16.mxu0 %v436_v1  ;;  %v318_v12 = vld [vmem:[%s537_s2] ss:$0 sm:$0xff]  ;;  %v407_v22 = vld [vmem:[%s540_s5 + $0x10] sm:$0xff]   ;;  %v408_v23 = vld [vmem:[%s540_s5 + $0x8] sm:$0xff]  }
   0xc   :  { %v409_v24 = vld [vmem:[%s540_s5] sm:$0xff]  }
   0xd   :  { %v322_v25 = vld [vmem:[%s539_s4] ss:$0 sm:$0xff]  ;;  %s438_s4 = smov [#allocation2]  }
   0xe   :  { %364 = vmatpush3.bf16.msra.mxu1 %v400_v5  ;;  %374 = vmatpush3.bf16.msra.mxu0 %v403_v8  ;;  %v328_v35 = vld [vmem:[%s541_s6] ss:$0 sm:$0xff]  ;;  %s307_s5 = sshll.u32 %s438_s4, 4  ;;  %s308_s5 = int_to_ptr.vmem [resolvable:$true] %s307_s5 }
   0xf   :  { %365 = vmatprep.subr.bf16.mxu1 %v436_v1  ;;  %375 = vmatprep.subr.bf16.mxu0 %v436_v1  ;;  %s414_s30 = scalar_lea.vmem %s308_s5, 256  ;;  %p419_p1 = scmp.lt.s32.totalorder %s308_s5, %s308_s5 }
  0x10   :  { %p415_p0 = scmp.ne.s32.totalorder %s308_s5, %s414_s30  ;;  %p420_p2 = scmp.lt.s32.totalorder %s414_s30, %s414_s30 }
  0x12   :  { %366 = vmatpush3.bf16.msra.mxu1 %v401_v6  ;;  %376 = vmatpush3.bf16.msra.mxu0 %v404_v9  ;;  %p421_p3 = por %p420_p2, %p419_p1 }
  0x13   :  { %377 = vmatprep.subr.bf16.mxu0 %v436_v1 }
  0x14   :  { %p422_p4 = pnand %p421_p3, %p415_p0 }
  0x16   :  { %378 = vmatpush3.bf16.msra.mxu0 %v405_v10 }
  0x17   :  { %379 = vmatprep.subr.bf16.mxu0 %v436_v1 }
  0x1a   :  { %380 = vmatpush3.bf16.msra.mxu0 %v406_v11 }
  0x1b   :  { %381 = vmatprep.subr.bf16.mxu0 %v436_v1 }
  0x1e   :  { %382 = vmatpush3.bf16.msra.mxu0 %v407_v22 }
  0x1f   :  { %383 = vmatprep.subr.bf16.mxu0 %v436_v1 }
  0x22   :  { %384 = vmatpush3.bf16.msra.mxu0 %v408_v23 }
  0x23   :  { %385 = vmatprep.subr.bf16.mxu0 %v436_v1 }
  0x26   :  { %386 = vmatpush3.bf16.msra.mxu0 %v409_v24 }
  0xc5   :  { %v88_v13 = vpop.f32.mrf.mxu1 }
  0xc6   :  { %v89_v15 = vadd.f32 %v318_v12, %v88_v13 }
  0xc7   :  { %v357_v14 = vpop.f32.mrf.mxu1 }
  0xc8   :  { %v95_v19 = vmax.f32 %v89_v15, 0.0 }
  0xc9   :  { %v91_v16 = vpop.f32.mrf.mxu1 }
  0xca   :  { %v92_v17 = vadd.f32 %v318_v12, %v91_v16 }
  0xcb   :  { %v358_v18 = vpop.f32.mrf.mxu1 }
  0xcc   :  { %v96_v20 = vmax.f32 %v92_v17, 0.0 }
  0xce   :  { %v97_v21 = vpack.c.bf16 %v96_v20, %v95_v19 }
  0xd0   :  { %368 = vmatmul.mubr.msk.bf16.vlgmr.msra.gmra.mxu1 %vm137_vm2, %v97_v21 }
 0x190   :  { %v175_v26 = vpop.f32.mrf.mxu1 }
 0x191   :  { %v176_v28 = vadd.f32 %v322_v25, %v175_v26 }
 0x192   :  { %v369_v27 = vpop.f32.mrf.mxu1 }
 0x193   :  { %v182_v32 = vmax.f32 %v176_v28, 0.0 }
 0x194   :  { %v178_v29 = vpop.f32.mrf.mxu1 }
 0x195   :  { %v179_v30 = vadd.f32 %v322_v25, %v178_v29 }
 0x196   :  { %v370_v31 = vpop.f32.mrf.mxu1 }
 0x197   :  { %v183_v33 = vmax.f32 %v179_v30, 0.0 }
 0x199   :  { %v184_v34 = vpack.c.bf16 %v183_v33, %v182_v32 }
 0x19b   :  { %388 = vmatmul.mubr.bf16.vlgmr.msra.gmra.mxu0 %v184_v34 }
 0x25b   :  { %v290_v36 = vpop.f32.mrf.mxu0 }
 0x25c   :  { %v291_v37 = vadd.f32 %v328_v35, %v290_v36 }
 0x25d   :  { %v389_v38 = vpop.f32.mrf.mxu0 }
 0x25e   :  { %410 = vtanh.f32 %v291_v37 }
 0x25f   :  { %v293_v39 = vpop.f32.mrf.mxu0 }
 0x260   :  { %v294_v40 = vadd.f32 %v328_v35, %v293_v39 }
 0x261   :  { %v390_v41 = vpop.f32.mrf.mxu0 }
 0x262   :  { %412 = vtanh.f32 %v294_v40 }
 0x26b   :  { %v411_v42 = vpop.eup %410 }
 0x26c   :  { %300 = vst.msk [vmem:[#allocation2] sm:$0xff] %vm299_vm3, %v411_v42 }
 0x26f   :  { %v413_v43 = vpop.eup %412 }
 0x270   :  { %301 = vst.msk [vmem:[#allocation2 + $0x8] sm:$0xff] %vm299_vm3, %v413_v43 }
 0x271   :  { %425 = shalt.err (!%p422_p4)
}
 0x272   :  { %s439_s6 = smov 128   ;;  %s440_s0 = smov 8  }
 0x273   :  { %313 = dma.vmem_to_hbm [thread:$0]  %s308_s5, 256, %s542_s7, [#allocation3], %s439_s6, %s439_s6, %s440_s0  }
 0x274   :  { %434 = dma.done.wait [#allocation3], 256  }
 0x275   :  { %435 = vsyncadd [#allocation3], 4294967040 }
 0x276   :  { %317 = vsyncpa [#allocation3], 1 }

</bundles_post_ra>
